<compile_context>
chip_gen: v6e
topology: v6e:2x2x1
jax: 0.10.0
libtpu: 0.0.40
codegen_flags: <defaults>
</compile_context>

<pallas_src>
import functools

import jax
import jax.numpy as jnp
from jax.experimental import pallas as pl
from jax.experimental.pallas import tpu as pltpu


def fc_sigmoid_kernel(x_ref, w1_ref, b1_ref, w2_ref, b2_ref, o_ref):
    # h1 = sigmoid(x @ W1 + b1); out = log_softmax(h1 @ W2 + b2, axis=-1)
    # MXU operands take the (possibly bf16) weight dtype; accumulate in f32.
    x = x_ref[...].astype(w1_ref.dtype)

    z1 = jnp.dot(x, w1_ref[...], preferred_element_type=jnp.float32) + b1_ref[...]
    h1 = jax.nn.sigmoid(z1)

    logits = (
        jnp.dot(h1.astype(w2_ref.dtype), w2_ref[...],
                preferred_element_type=jnp.float32)
        + b2_ref[...]
    )

    # Numerically stable log_softmax along the last axis.  Padded output
    # columns carry a -1e30 bias -> exp() underflows to 0, so they do not
    # perturb the normalizer.
    m = jnp.max(logits, axis=-1, keepdims=True)
    shifted = logits - m
    lse = jnp.log(jnp.sum(jnp.exp(shifted), axis=-1, keepdims=True))
    o_ref[...] = (shifted - lse).astype(o_ref.dtype)


def _round_up(v, m):
    return ((v + m - 1) // m) * m


def _default_min_batch_blocks():
    """Aim for >=2 batch blocks only on chips with 2 TensorCores behind one
    Pallas core (v7x / v4 megacore), so ("parallel",) actually shards the grid;
    on 1-TC chips (v5e / v6e) a single big block avoids extra grid-step cost."""
    try:
        kind = jax.devices()[0].device_kind.lower()
    except Exception:
        return 1
    if "v7" in kind or "7x" in kind or "v4" in kind:
        return 2
    return 1


def fc_network_sigmoid(image, params, *, tb=1024, mxu_dtype=jnp.bfloat16,
                       out_dtype=jnp.float32, min_batch_blocks=None):
    """Forward pass of FcNetworkSigmoid.

    image:  (B, 1, 28, 28) or (B, 28, 28), float32 or bfloat16 (NCHW).
    params: dict with w1 (784, n), b1 (1, n), w2 (n, 10), b2 (1, 10)
            (nn.Linear weights stored pre-transposed as (in, out)).
    Returns (B, 10) log-probabilities in out_dtype (default float32).
    """
    B = image.shape[0]
    d_in = 28 * 28
    x = image.reshape(B, d_in)  # view under jit; no extra HBM pass over x
    if x.dtype not in (jnp.dtype(jnp.float32), jnp.dtype(jnp.bfloat16)):
        x = x.astype(jnp.float32)

    w1, b1 = params["w1"], params["b1"]
    w2, b2 = params["w2"], params["b2"]
    n = w1.shape[1]
    n_out = w2.shape[1]

    # Lane-dense padding of hidden / output dims to multiples of 128.
    n_pad = max(128, _round_up(n, 128))
    out_pad = max(128, _round_up(n_out, 128))

    # Hidden padding: zero weight cols + zero bias -> sigmoid(0)=0.5 in padded
    # hidden lanes, but the corresponding zero rows of w2p kill their
    # contribution to the logits.  Weights stored in mxu_dtype (bf16 default).
    w1p = jnp.zeros((d_in, n_pad), jnp.float32).at[:, :n].set(w1).astype(mxu_dtype)
    b1p = jnp.zeros((1, n_pad), jnp.float32).at[:, :n].set(b1)
    w2p = jnp.zeros((n_pad, out_pad), jnp.float32).at[:n, :n_out].set(w2).astype(mxu_dtype)
    # Output padding: large-negative bias so padded logits vanish in softmax.
    b2p = jnp.full((1, out_pad), -1e30, jnp.float32).at[:, :n_out].set(b2)

    # Batch tiling.  Single full-array block for small batches (block == full
    # array dim -> no (8, .) divisibility requirement, no padding copy);
    # otherwise 8-row-aligned tiles with the ragged last block handled by
    # Pallas (OOB rows are row-independent garbage, never written back).
    if min_batch_blocks is None:
        min_batch_blocks = _default_min_batch_blocks()
    if B <= 8 or (min_batch_blocks <= 1 and B <= tb):
        TB = B
    else:
        TB = min(tb, _round_up(pl.cdiv(B, max(min_batch_blocks, 1)), 8))
        TB = max(8, (TB // 8) * 8)
    grid_b = pl.cdiv(B, TB)

    out = pl.pallas_call(
        fc_sigmoid_kernel,
        out_shape=jax.ShapeDtypeStruct((B, out_pad), out_dtype),
        grid=(grid_b,),
        in_specs=[
            pl.BlockSpec((TB, d_in), lambda i: (i, 0)),        # x: streamed per tile
            pl.BlockSpec((d_in, n_pad), lambda i: (0, 0)),     # w1: VMEM-resident
            pl.BlockSpec((1, n_pad), lambda i: (0, 0)),        # b1: VMEM-resident
            pl.BlockSpec((n_pad, out_pad), lambda i: (0, 0)),  # w2: VMEM-resident
            pl.BlockSpec((1, out_pad), lambda i: (0, 0)),      # b2: VMEM-resident
        ],
        out_specs=pl.BlockSpec((TB, out_pad), lambda i: (i, 0)),
        compiler_params=pltpu.CompilerParams(
            dimension_semantics=("parallel",),
            vmem_limit_bytes=64 * 1024 * 1024,
        ),
    )(x, w1p, b1p, w2p, b2p)

    return out[:B, :n_out]


def init_params(key, n):
    """nn.Linear-shaped params, stored transposed as (in, out).

    Uniform(-1/sqrt(fan_in), 1/sqrt(fan_in)) mirrors torch's default init.
    """
    k1, k2, k3, k4 = jax.random.split(key, 4)
    d_in = 28 * 28

    def u(k, shape, fan_in):
        bound = 1.0 / jnp.sqrt(fan_in)
        return jax.random.uniform(k, shape, jnp.float32, -bound, bound)

    return {
        "w1": u(k1, (d_in, n), d_in),
        "b1": u(k2, (1, n), d_in),
        "w2": u(k3, (n, 10), n),
        "b2": u(k4, (1, 10), n),
    }


def reference_forward(image, params):
    B = image.shape[0]
    x = image.reshape(B, 28 * 28).astype(jnp.float32)
    h1 = jax.nn.sigmoid(x @ params["w1"] + params["b1"])
    logits = h1 @ params["w2"] + params["b2"]
    return jax.nn.log_softmax(logits, axis=1)


if __name__ == "__main__":
    key = jax.random.PRNGKey(0)
    k_img, k_img2, k_params = jax.random.split(key, 3)

    n_hidden = 32
    params = init_params(k_params, n_hidden)

    # --- Small batch, single full-array block, f32 MXU: tight check ---------
    batch = 2
    image = jax.random.normal(k_img, (batch, 1, 28, 28), jnp.float32)  # NCHW
    fwd_f32 = jax.jit(functools.partial(fc_network_sigmoid, mxu_dtype=jnp.float32))
    out = jax.block_until_ready(fwd_f32(image, params))
    ref = reference_forward(image, params)
    assert out.shape == (batch, 10)
    assert jnp.allclose(out, ref, atol=1e-5, rtol=1e-5)

    # --- Default production path (bf16 MXU operands): looser tolerance ------
    fwd_bf16 = jax.jit(fc_network_sigmoid)
    out_bf16 = jax.block_until_ready(fwd_bf16(image, params))
    assert out_bf16.shape == (batch, 10)
    assert jnp.allclose(out_bf16, ref, atol=5e-2, rtol=5e-2)

    # --- Multi-block grid with a ragged last tile (exercises the megacore
    #     split and Pallas-handled uneven batch), f32 MXU: tight check --------
    batch2 = 20
    image2 = jax.random.normal(k_img2, (batch2, 1, 28, 28), jnp.float32)
    fwd_multi = jax.jit(functools.partial(
        fc_network_sigmoid, mxu_dtype=jnp.float32, min_batch_blocks=2))
    out2 = jax.block_until_ready(fwd_multi(image2, params))
    ref2 = reference_forward(image2, params)
    assert out2.shape == (batch2, 10)
    assert jnp.allclose(out2, ref2, atol=1e-5, rtol=1e-5)

    print("KERNEL_OK")
</pallas_src>

<mosaic_0001>
module attributes {stable_mosaic.version = 11 : i64} {
  func.func @fc_sigmoid_kernel(%arg0: i32, %arg1: memref<2x784xf32, #tpu.memory_space<vmem>>, %arg2: memref<784x128xf32, #tpu.memory_space<vmem>>, %arg3: memref<1x128xf32, #tpu.memory_space<vmem>>, %arg4: memref<128x128xf32, #tpu.memory_space<vmem>>, %arg5: memref<1x128xf32, #tpu.memory_space<vmem>>, %arg6: memref<2x128xf32, #tpu.memory_space<vmem>>) attributes {dimension_semantics = [#tpu.dimension_semantics<parallel>], iteration_bounds = array<i64: 1>, scalar_prefetch = 0 : i64, scratch_operands = 0 : i64, tpu.core_type = #tpu.core_type<tc>, window_params = [{transform_indices = @transform_0, window_bounds = array<i64: 2, 784>}, {pipeline_mode = #tpu.pipeline_mode<synchronous>, transform_indices = @transform_1, window_bounds = array<i64: 784, 128>}, {pipeline_mode = #tpu.pipeline_mode<synchronous>, transform_indices = @transform_2, window_bounds = array<i64: 1, 128>}, {pipeline_mode = #tpu.pipeline_mode<synchronous>, transform_indices = @transform_3, window_bounds = array<i64: 128, 128>}, {pipeline_mode = #tpu.pipeline_mode<synchronous>, transform_indices = @transform_4, window_bounds = array<i64: 1, 128>}, {transform_indices = @transform_5, window_bounds = array<i64: 2, 128>}]} {
    %c0 = arith.constant 0 : index
    %c0_0 = arith.constant 0 : index
    %0 = vector.load %arg1[%c0, %c0_0] : memref<2x784xf32, #tpu.memory_space<vmem>>, vector<2x784xf32>
    %c0_1 = arith.constant 0 : index
    %c0_2 = arith.constant 0 : index
    %1 = vector.load %arg2[%c0_1, %c0_2] : memref<784x128xf32, #tpu.memory_space<vmem>>, vector<784x128xf32>
    %cst = arith.constant dense<0.000000e+00> : vector<2x128xf32>
    %2 = tpu.matmul %0, %1, %cst {dimension_numbers = #tpu.dot_dimension_numbers<[1], [0], [0], [1], [0, 0, 1, 1], [], []>} : vector<2x784xf32>, vector<784x128xf32>, vector<2x128xf32> -> vector<2x128xf32>
    %c0_3 = arith.constant 0 : index
    %c0_4 = arith.constant 0 : index
    %3 = vector.load %arg3[%c0_3, %c0_4] : memref<1x128xf32, #tpu.memory_space<vmem>>, vector<1x128xf32>
    %4 = vector.broadcast %3 : vector<1x128xf32> to vector<2x128xf32>
    %5 = arith.addf %2, %4 : vector<2x128xf32>
    %6 = arith.negf %5 : vector<2x128xf32>
    %7 = math.exp %6 : vector<2x128xf32>
    %cst_5 = arith.constant 1.000000e+00 : f32
    %8 = vector.broadcast %cst_5 : f32 to vector<2x128xf32>
    %9 = arith.addf %8, %7 : vector<2x128xf32>
    %10 = arith.divf %8, %9 : vector<2x128xf32>
    %c0_6 = arith.constant 0 : index
    %c0_7 = arith.constant 0 : index
    %11 = vector.load %arg4[%c0_6, %c0_7] : memref<128x128xf32, #tpu.memory_space<vmem>>, vector<128x128xf32>
    %cst_8 = arith.constant dense<0.000000e+00> : vector<2x128xf32>
    %12 = tpu.matmul %10, %11, %cst_8 {dimension_numbers = #tpu.dot_dimension_numbers<[1], [0], [0], [1], [0, 0, 1, 1], [], []>} : vector<2x128xf32>, vector<128x128xf32>, vector<2x128xf32> -> vector<2x128xf32>
    %c0_9 = arith.constant 0 : index
    %c0_10 = arith.constant 0 : index
    %13 = vector.load %arg5[%c0_9, %c0_10] : memref<1x128xf32, #tpu.memory_space<vmem>>, vector<1x128xf32>
    %14 = vector.broadcast %13 : vector<1x128xf32> to vector<2x128xf32>
    %15 = arith.addf %12, %14 : vector<2x128xf32>
    %cst_11 = arith.constant dense<0xFF800000> : vector<2xf32>
    %16 = vector.multi_reduction <maximumf>, %15, %cst_11 [1] : vector<2x128xf32> to vector<2xf32>
    %17 = vector.shape_cast %16 : vector<2xf32> to vector<2x1xf32>
    %18 = vector.broadcast %17 : vector<2x1xf32> to vector<2x128xf32>
    %19 = arith.subf %15, %18 : vector<2x128xf32>
    %20 = math.exp %19 : vector<2x128xf32>
    %cst_12 = arith.constant dense<0.000000e+00> : vector<2xf32>
    %21 = vector.multi_reduction <add>, %20, %cst_12 [1] : vector<2x128xf32> to vector<2xf32>
    %22 = vector.shape_cast %21 : vector<2xf32> to vector<2x1xf32>
    %23 = math.log %22 : vector<2x1xf32>
    %24 = vector.broadcast %23 : vector<2x1xf32> to vector<2x128xf32>
    %25 = arith.subf %19, %24 : vector<2x128xf32>
    %c0_13 = arith.constant 0 : index
    %c0_14 = arith.constant 0 : index
    %26 = vector.load %arg6[%c0_13, %c0_14] : memref<2x128xf32, #tpu.memory_space<vmem>>, vector<2x128xf32>
    tpu.vector_store %arg6[%c0_13, %c0_14], %25 {strides = array<i32>} : memref<2x128xf32, #tpu.memory_space<vmem>>, vector<2x128xf32>,
    return
  }
  func.func @transform_0(%arg0: i32) -> (i32, i32) {
    %c0_i32 = arith.constant 0 : i32
    %c0_i32_0 = arith.constant 0 : i32
    return %arg0, %c0_i32 : i32, i32
  }
  func.func @transform_1(%arg0: i32) -> (i32, i32) {
    %c0_i32 = arith.constant 0 : i32
    %c0_i32_0 = arith.constant 0 : i32
    %c0_i32_1 = arith.constant 0 : i32
    return %c0_i32, %c0_i32_0 : i32, i32
  }
  func.func @transform_2(%arg0: i32) -> (i32, i32) {
    %c0_i32 = arith.constant 0 : i32
    %c0_i32_0 = arith.constant 0 : i32
    %c0_i32_1 = arith.constant 0 : i32
    return %c0_i32, %c0_i32_0 : i32, i32
  }
  func.func @transform_3(%arg0: i32) -> (i32, i32) {
    %c0_i32 = arith.constant 0 : i32
    %c0_i32_0 = arith.constant 0 : i32
    %c0_i32_1 = arith.constant 0 : i32
    return %c0_i32, %c0_i32_0 : i32, i32
  }
  func.func @transform_4(%arg0: i32) -> (i32, i32) {
    %c0_i32 = arith.constant 0 : i32
    %c0_i32_0 = arith.constant 0 : i32
    %c0_i32_1 = arith.constant 0 : i32
    return %c0_i32, %c0_i32_0 : i32, i32
  }
  func.func @transform_5(%arg0: i32) -> (i32, i32) {
    %c0_i32 = arith.constant 0 : i32
    %c0_i32_0 = arith.constant 0 : i32
    return %arg0, %c0_i32 : i32, i32
  }
}

</mosaic_0001>

<bundles_post_ra>
// kernel: fc_network_sigmoid.1
= control target key start
LH: loop header
LB: loop body
LE: loop exit
PB: predicated region body
PF: predicated region fallthrough
CT: control target
= control target key end

     0   :  { %v786_v27 = vmov 1983009808   ;;  %v134_v29 = vlaneseq  ;;  %s1208_s0 = inlined_call_operand.vmem [shape: f32[2,784], index: 0, kind: input, shape index: {}]   ;;  %s1209_s1 = inlined_call_operand.vmem [shape: f32[784,128], index: 1, kind: input, shape index: {}]   ;;  %s1210_s2 = inlined_call_operand.vmem [shape: f32[1,128], index: 2, kind: input, shape index: {}]   ;;  %s1211_s3 = inlined_call_operand.vmem [shape: f32[128,128], index: 3, kind: input, shape index: {}]   ;;  %s1212_s4 = inlined_call_operand.vmem [shape: f32[1,128], index: 4, kind: input, shape index: {}]   ;;  %s1213_s5 = inlined_call_operand.hbm [shape: f32[2,128], index: 5, kind: output, shape index: {}]  }
   0x1   :  { %v54_v0 = vld [vmem:[%s1209_s1 + $0xf8] sm:$0xff]  ;;  %v53_v2 = vld [vmem:[%s1209_s1 + $0xf0] sm:$0xff]  ;;  %v52_v6 = vld [vmem:[%s1209_s1 + $0xe8] sm:$0xff]  ;;  %v132_v28 = vunpack.c.l.s4 %v786_v27 }
   0x2   :  { %v38_v1 = vld [vmem:[%s1209_s1 + $0x78] sm:$0xff]  ;;  %583 = vmatprep.subr.mxu0 %v54_v0  ;;  %v37_v4 = vld [vmem:[%s1209_s1 + $0x70] sm:$0xff]  ;;  %v36_v8 = vld [vmem:[%s1209_s1 + $0x68] sm:$0xff]  ;;  %v135_v39 = vshrl.u32 %v134_v29, 7 }
   0x3   :  { %v86_v3 = vld [vmem:[%s1209_s1 + $0x1f8] sm:$0xff]  ;;  %584 = vmatpush3.msra.mxu0 %v38_v1  ;;  %v85_v7 = vld [vmem:[%s1209_s1 + $0x1f0] sm:$0xff]  ;;  %v84_v10 = vld [vmem:[%s1209_s1 + $0x1e8] sm:$0xff]  ;;  %v133_v38 = vunpack.c.0.s8 %v132_v28 }
   0x4   :  { %v70_v5 = vld [vmem:[%s1209_s1 + $0x178] sm:$0xff]  ;;  %618 = vmatprep.subr.mxu1 %v86_v3  ;;  %585 = vmatprep.subr.mxu0 %v53_v2  ;;  %v69_v9 = vld [vmem:[%s1209_s1 + $0x170] sm:$0xff]  ;;  %v51_v11 = vld [vmem:[%s1209_s1 + $0xe0] sm:$0xff] }
   0x5   :  { %619 = vmatpush3.msra.mxu1 %v70_v5  ;;  %586 = vmatpush3.msra.mxu0 %v37_v4  ;;  %v68_v12 = vld [vmem:[%s1209_s1 + $0x168] sm:$0xff]  ;;  %v35_v13 = vld [vmem:[%s1209_s1 + $0x60] sm:$0xff]  ;;  %v50_v15 = vld [vmem:[%s1209_s1 + $0xd8] sm:$0xff]  ;;  %v949_v48 = vsub.s32 %v133_v38, %v135_v39 }
   0x6   :  { %620 = vmatprep.subr.mxu1 %v85_v7  ;;  %587 = vmatprep.subr.mxu0 %v52_v6  ;;  %v83_v14 = vld [vmem:[%s1209_s1 + $0x1e0] sm:$0xff]  ;;  %v34_v17 = vld [vmem:[%s1209_s1 + $0x58] sm:$0xff]  ;;  %v49_v19 = vld [vmem:[%s1209_s1 + $0xd0] sm:$0xff] }
   0x7   :  { %621 = vmatpush3.msra.mxu1 %v69_v9  ;;  %588 = vmatpush3.msra.mxu0 %v36_v8  ;;  %v67_v16 = vld [vmem:[%s1209_s1 + $0x160] sm:$0xff]  ;;  %v82_v18 = vld [vmem:[%s1209_s1 + $0x1d8] sm:$0xff]  ;;  %v33_v21 = vld [vmem:[%s1209_s1 + $0x50] sm:$0xff] }
   0x8   :  { %622 = vmatprep.subr.mxu1 %v84_v10  ;;  %589 = vmatprep.subr.mxu0 %v51_v11  ;;  %v66_v20 = vld [vmem:[%s1209_s1 + $0x158] sm:$0xff]  ;;  %v81_v22 = vld [vmem:[%s1209_s1 + $0x1d0] sm:$0xff]  ;;  %v48_v23 = vld [vmem:[%s1209_s1 + $0xc8] sm:$0xff] }
   0x9   :  { %623 = vmatpush3.msra.mxu1 %v68_v12  ;;  %590 = vmatpush3.msra.mxu0 %v35_v13  ;;  %v65_v24 = vld [vmem:[%s1209_s1 + $0x150] sm:$0xff]  ;;  %v32_v25 = vld [vmem:[%s1209_s1 + $0x48] sm:$0xff]  ;;  %v47_v30 = vld [vmem:[%s1209_s1 + $0xc0] sm:$0xff] }
   0xa   :  { %624 = vmatprep.subr.mxu1 %v83_v14  ;;  %591 = vmatprep.subr.mxu0 %v50_v15  ;;  %v80_v26 = vld [vmem:[%s1209_s1 + $0x1c8] sm:$0xff]  ;;  %v31_v32 = vld [vmem:[%s1209_s1 + $0x40] sm:$0xff]  ;;  %v46_v34 = vld [vmem:[%s1209_s1 + $0xb8] sm:$0xff] }
   0xb   :  { %625 = vmatpush3.msra.mxu1 %v67_v16  ;;  %592 = vmatpush3.msra.mxu0 %v34_v17  ;;  %v64_v31 = vld [vmem:[%s1209_s1 + $0x148] sm:$0xff]  ;;  %v79_v33 = vld [vmem:[%s1209_s1 + $0x1c0] sm:$0xff]  ;;  %v30_v36 = vld [vmem:[%s1209_s1 + $0x38] sm:$0xff] }
   0xc   :  { %626 = vmatprep.subr.mxu1 %v82_v18  ;;  %593 = vmatprep.subr.mxu0 %v49_v19  ;;  %v63_v35 = vld [vmem:[%s1209_s1 + $0x140] sm:$0xff]  ;;  %v78_v37 = vld [vmem:[%s1209_s1 + $0x1b8] sm:$0xff]  ;;  %v45_v40 = vld [vmem:[%s1209_s1 + $0xb0] sm:$0xff] }
   0xd   :  { %627 = vmatpush3.msra.mxu1 %v66_v20  ;;  %594 = vmatpush3.msra.mxu0 %v33_v21  ;;  %v62_v41 = vld [vmem:[%s1209_s1 + $0x138] sm:$0xff]  ;;  %v29_v42 = vld [vmem:[%s1209_s1 + $0x30] sm:$0xff]  ;;  %v44_v44 = vld [vmem:[%s1209_s1 + $0xa8] sm:$0xff] }
   0xe   :  { %628 = vmatprep.subr.mxu1 %v81_v22  ;;  %595 = vmatprep.subr.mxu0 %v48_v23  ;;  %v77_v43 = vld [vmem:[%s1209_s1 + $0x1b0] sm:$0xff]  ;;  %v28_v46 = vld [vmem:[%s1209_s1 + $0x28] sm:$0xff]  ;;  %v43_v49 = vld [vmem:[%s1209_s1 + $0xa0] sm:$0xff] }
   0xf   :  { %629 = vmatpush3.msra.mxu1 %v65_v24  ;;  %596 = vmatpush3.msra.mxu0 %v32_v25  ;;  %v61_v45 = vld [vmem:[%s1209_s1 + $0x130] sm:$0xff]  ;;  %v76_v47 = vld [vmem:[%s1209_s1 + $0x1a8] sm:$0xff]  ;;  %v21_v51 = vld [vmem:[%s1208_s0] sm:$0xff] }
  0x10   :  { %630 = vmatprep.subr.mxu1 %v80_v26  ;;  %597 = vmatprep.subr.mxu0 %v47_v30  ;;  %v60_v50 = vld [vmem:[%s1209_s1 + $0x128] sm:$0xff]  ;;  %v27_v52 = vld [vmem:[%s1209_s1 + $0x20] sm:$0xff]  ;;  %v42_v54 = vld [vmem:[%s1209_s1 + $0x98] sm:$0xff]  ;;  %v137_v58 = vrot.slane %v21_v51, %v949_v48  ;;  %v130_v59 = vcombine.high %v21_v51, %v21_v51 }
  0x11   :  { %631 = vmatpush3.msra.mxu1 %v64_v31  ;;  %598 = vmatpush3.msra.mxu0 %v31_v32  ;;  %v75_v53 = vld [vmem:[%s1209_s1 + $0x1a0] sm:$0xff]  ;;  %v26_v56 = vld [vmem:[%s1209_s1 + $0x18] sm:$0xff]  ;;  %v41_v60 = vld [vmem:[%s1209_s1 + $0x90] sm:$0xff] }
  0x12   :  { %632 = vmatprep.subr.mxu1 %v79_v33  ;;  %599 = vmatprep.subr.mxu0 %v46_v34  ;;  %v59_v55 = vld [vmem:[%s1209_s1 + $0x120] sm:$0xff]  ;;  %v74_v57 = vld [vmem:[%s1209_s1 + $0x198] sm:$0xff]  ;;  %v25_v62 = vld [vmem:[%s1209_s1 + $0x10] sm:$0xff]  ;;  %v145_v4 = vcombine.high %v137_v58, %v137_v58  ;;  %v144_v5 = vrot.slane %v130_v59, %v949_v48 }
  0x13   :  { %633 = vmatpush3.msra.mxu1 %v63_v35  ;;  %600 = vmatpush3.msra.mxu0 %v30_v36  ;;  %v58_v61 = vld [vmem:[%s1209_s1 + $0x118] sm:$0xff]  ;;  %v73_v63 = vld [vmem:[%s1209_s1 + $0x190] sm:$0xff]  ;;  %v40_v0 = vld [vmem:[%s1209_s1 + $0x88] sm:$0xff] }
  0x14   :  { %634 = vmatprep.subr.mxu1 %v78_v37  ;;  %601 = vmatprep.subr.mxu0 %v45_v40  ;;  %v57_v1 = vld [vmem:[%s1209_s1 + $0x110] sm:$0xff]  ;;  %v24_v2 = vld [vmem:[%s1209_s1 + $0x8] sm:$0xff]  ;;  %v39_v6 = vld [vmem:[%s1209_s1 + $0x80] sm:$0xff]  ;;  %v146_v12 = vcombine.high %v144_v5, %v144_v5 }
  0x15   :  { %635 = vmatpush3.msra.mxu1 %v62_v41  ;;  %602 = vmatpush3.msra.mxu0 %v29_v42  ;;  %v72_v3 = vld [vmem:[%s1209_s1 + $0x188] sm:$0xff]  ;;  %v23_v7 = vld [vmem:[%s1209_s1] sm:$0xff]  ;;  %v118_v10 = vld [vmem:[%s1209_s1 + $0x2f8] sm:$0xff] }
  0x16   :  { %636 = vmatprep.subr.mxu1 %v77_v43  ;;  %603 = vmatprep.subr.mxu0 %v44_v44  ;;  %v56_v8 = vld [vmem:[%s1209_s1 + $0x108] sm:$0xff]  ;;  %v71_v9 = vld [vmem:[%s1209_s1 + $0x180] sm:$0xff]  ;;  %v102_v13 = vld [vmem:[%s1209_s1 + $0x278] sm:$0xff] }
  0x17   :  { %637 = vmatpush3.msra.mxu1 %v61_v45  ;;  %604 = vmatpush3.msra.mxu0 %v28_v46  ;;  %v55_v11 = vld [vmem:[%s1209_s1 + $0x100] sm:$0xff]  ;;  %v22_v14 = vld [vmem:[%s1208_s0 + $0x8] sm:$0x3f]  ;;  %v117_v15 = vld [vmem:[%s1209_s1 + $0x2f0] sm:$0xff] }
  0x18   :  { %638 = vmatprep.subr.mxu1 %v76_v47  ;;  %605 = vmatprep.subr.mxu0 %v43_v49  ;;  %v1032_v16 = vrot.slane %v22_v14, %v949_v48 }
  0x19   :  { %639 = vmatpush3.msra.mxu1 %v60_v50  ;;  %606 = vmatpush3.msra.mxu0 %v27_v52 }
  0x1a   :  { %640 = vmatprep.subr.mxu1 %v75_v53  ;;  %607 = vmatprep.subr.mxu0 %v42_v54 }
  0x1b   :  { %641 = vmatpush3.msra.mxu1 %v59_v55  ;;  %608 = vmatpush3.msra.mxu0 %v26_v56 }
  0x1c   :  { %642 = vmatprep.subr.mxu1 %v74_v57  ;;  %609 = vmatprep.subr.mxu0 %v41_v60 }
  0x1d   :  { %643 = vmatpush3.msra.mxu1 %v58_v61  ;;  %610 = vmatpush3.msra.mxu0 %v25_v62 }
  0x1e   :  { %644 = vmatprep.subr.mxu1 %v73_v63  ;;  %611 = vmatprep.subr.mxu0 %v40_v0 }
  0x1f   :  { %645 = vmatpush3.msra.mxu1 %v57_v1  ;;  %612 = vmatpush3.msra.mxu0 %v24_v2 }
  0x20   :  { %646 = vmatprep.subr.mxu1 %v72_v3  ;;  %613 = vmatprep.subr.mxu0 %v39_v6 }
  0x21   :  { %236 = vmatprep.mubr.f32.mxu0 %v145_v4  ;;  %614 = vmatpush3.msra.mxu0 %v23_v7 }
  0x22   :  { %647 = vmatpush3.msra.mxu1 %v56_v8  ;;  %237 = vmatmul.mubr.f32.vlgmr.msra.gmra.mxu0 %v137_v58 }
  0x23   :  { %648 = vmatprep.subr.mxu1 %v71_v9 }
  0x24   :  { %10 = vsyncpa [#allocation3], 0  ;;  %653 = vmatprep.subr.mxu0 %v118_v10  ;;  %649 = vmatpush3.msra.mxu1 %v55_v11  ;;  %v101_v17 = vld [vmem:[%s1209_s1 + $0x270] sm:$0xff]  ;;  %v116_v18 = vld [vmem:[%s1209_s1 + $0x2e8] sm:$0xff]  ;;  %v147_v19 = vcombine.high %v22_v14, %v22_v14  ;;  %v162_v20 = vcombine.high %v1032_v16, %v1032_v16  ;;  %v787_v25 = vmov 0.0   ;;  %vm169_vm0 = vcmask 130048  }
  0x25   :  { %306 = vmatprep.mubr.f32.mxu1 %v146_v12  ;;  %654 = vmatpush3.msra.mxu0 %v102_v13  ;;  %v100_v21 = vld [vmem:[%s1209_s1 + $0x268] sm:$0xff]  ;;  %v115_v23 = vld [vmem:[%s1209_s1 + $0x2e0] sm:$0xff]  ;;  %v114_v27 = vld [vmem:[%s1209_s1 + $0x2d8] sm:$0xff]  ;;  %vm788_vm1 = vmmov 0   ;;  %vm551_vm2 = vcmask 1041408  }
  0x26   :  { %307 = vmatmul.mubr.f32.vlgmr.msra.gmra.mxu1 %v144_v5  ;;  %655 = vmatprep.subr.mxu0 %v117_v15  ;;  %v120_v22 = vld [vmem:[%s1209_s1 + $0x308] sm:$0xff]  ;;  %v99_v24 = vld [vmem:[%s1209_s1 + $0x260] sm:$0xff]  ;;  %v161_v28 = vrot.slane %v147_v19, %v949_v48  ;;  %v98_v29 = vld [vmem:[%s1209_s1 + $0x258] sm:$0xff] }
  0x27   :  { %656 = vmatpush3.msra.mxu0 %v101_v17  ;;  %376 = vmatprep.mubr.f32.mxu0 %v162_v20  ;;  %v119_v26 = vld [vmem:[%s1209_s1 + $0x300] sm:$0xff]  ;;  %v113_v30 = vld [vmem:[%s1209_s1 + $0x2d0] sm:$0xff]  ;;  %v112_v32 = vld [vmem:[%s1209_s1 + $0x2c8] sm:$0xff] }
  0x28   :  { %657 = vmatprep.subr.mxu0 %v116_v18  ;;  %708 = vmatprep.subr.mxu1 %v787_v25  ;;  %v97_v31 = vld [vmem:[%s1209_s1 + $0x250] sm:$0xff]  ;;  %v96_v33 = vld [vmem:[%s1209_s1 + $0x248] sm:$0xff]  ;;  %v111_v34 = vld [vmem:[%s1209_s1 + $0x2c0] sm:$0xff] }
  0x29   :  { %658 = vmatpush3.msra.mxu0 %v100_v21  ;;  %709 = vmatpush3.msra.mxu1 %v120_v22  ;;  %v95_v35 = vld [vmem:[%s1209_s1 + $0x240] sm:$0xff]  ;;  %v110_v36 = vld [vmem:[%s1209_s1 + $0x2b8] sm:$0xff]  ;;  %v109_v38 = vld [vmem:[%s1209_s1 + $0x2b0] sm:$0xff] }
  0x2a   :  { %659 = vmatprep.subr.mxu0 %v115_v23  ;;  %710 = vmatprep.subr.mxu1 %v787_v25  ;;  %v94_v37 = vld [vmem:[%s1209_s1 + $0x238] sm:$0xff]  ;;  %v93_v39 = vld [vmem:[%s1209_s1 + $0x230] sm:$0xff]  ;;  %v108_v40 = vld [vmem:[%s1209_s1 + $0x2a8] sm:$0xff] }
  0x2b   :  { %660 = vmatpush3.msra.mxu0 %v99_v24  ;;  %711 = vmatpush3.msra.mxu1 %v119_v26  ;;  %v92_v41 = vld [vmem:[%s1209_s1 + $0x228] sm:$0xff]  ;;  %v107_v42 = vld [vmem:[%s1209_s1 + $0x2a0] sm:$0xff]  ;;  %v106_v44 = vld [vmem:[%s1209_s1 + $0x298] sm:$0xff] }
  0x2c   :  { %661 = vmatprep.subr.mxu0 %v114_v27  ;;  %712 = vmatprep.mubr.msk.f32.mxu1 %vm788_vm1, %v787_v25  ;;  %v91_v43 = vld [vmem:[%s1209_s1 + $0x220] sm:$0xff]  ;;  %v90_v45 = vld [vmem:[%s1209_s1 + $0x218] sm:$0xff]  ;;  %v105_v46 = vld [vmem:[%s1209_s1 + $0x290] sm:$0xff] }
  0x2d   :  { %662 = vmatpush3.msra.mxu0 %v98_v29  ;;  %713 = vmatmul.mubr.msk.f32.vlgmr.msra.gmra.mxu1 %vm169_vm0, %v161_v28  ;;  %v89_v47 = vld [vmem:[%s1209_s1 + $0x210] sm:$0xff]  ;;  %v104_v48 = vld [vmem:[%s1209_s1 + $0x288] sm:$0xff]  ;;  %v103_v50 = vld [vmem:[%s1209_s1 + $0x280] sm:$0xff] }
  0x2e   :  { %663 = vmatprep.subr.mxu0 %v113_v30  ;;  %715 = vmatprep.subr.mxu1 %v787_v25  ;;  %v88_v49 = vld [vmem:[%s1209_s1 + $0x208] sm:$0xff]  ;;  %v87_v51 = vld [vmem:[%s1209_s1 + $0x200] sm:$0xff]  ;;  %v473_v52 = vld [vmem:[%s1211_s3 + $0x78] sm:$0xff] }
  0x2f   :  { %664 = vmatpush3.msra.mxu0 %v97_v31  ;;  %747 = vmatprep.mubr.msk.f32.mxu1 %vm788_vm1, %v787_v25  ;;  %v472_v53 = vld [vmem:[%s1211_s3 + $0x70] sm:$0xff]  ;;  %v471_v54 = vld [vmem:[%s1211_s3 + $0x68] sm:$0xff]  ;;  %v470_v55 = vld [vmem:[%s1211_s3 + $0x60] sm:$0xff] }
  0x30   :  { %665 = vmatprep.subr.mxu0 %v112_v32  ;;  %716 = vmatpush3.msra.mxu1 %v473_v52  ;;  %v469_v56 = vld [vmem:[%s1211_s3 + $0x58] sm:$0xff]  ;;  %v468_v57 = vld [vmem:[%s1211_s3 + $0x50] sm:$0xff]  ;;  %v467_v58 = vld [vmem:[%s1211_s3 + $0x48] sm:$0xff] }
  0x31   :  { %666 = vmatpush3.msra.mxu0 %v96_v33  ;;  %717 = vmatprep.subr.mxu1 %v787_v25  ;;  %v466_v59 = vld [vmem:[%s1211_s3 + $0x40] sm:$0xff]  ;;  %v465_v60 = vld [vmem:[%s1211_s3 + $0x38] sm:$0xff]  ;;  %v464_v61 = vld [vmem:[%s1211_s3 + $0x30] sm:$0xff] }
  0x32   :  { %667 = vmatprep.subr.mxu0 %v111_v34  ;;  %718 = vmatpush3.msra.mxu1 %v472_v53  ;;  %v463_v62 = vld [vmem:[%s1211_s3 + $0x28] sm:$0xff]  ;;  %v462_v63 = vld [vmem:[%s1211_s3 + $0x20] sm:$0xff]  ;;  %v461_v0 = vld [vmem:[%s1211_s3 + $0x18] sm:$0xff] }
  0x33   :  { %668 = vmatpush3.msra.mxu0 %v95_v35  ;;  %719 = vmatprep.subr.mxu1 %v787_v25  ;;  %v460_v1 = vld [vmem:[%s1211_s3 + $0x10] sm:$0xff]  ;;  %v459_v2 = vld [vmem:[%s1211_s3 + $0x8] sm:$0xff]  ;;  %v458_v3 = vld [vmem:[%s1211_s3] sm:$0xff] }
  0x34   :  { %669 = vmatprep.subr.mxu0 %v110_v36  ;;  %720 = vmatpush3.msra.mxu1 %v471_v54  ;;  %v579_v11 = vld [vmem:[%s1210_s2] ss:$0 sm:$0xff]  ;;  %s789_s2 = smov [#allocation2]  }
  0x35   :  { %670 = vmatpush3.msra.mxu0 %v94_v37  ;;  %721 = vmatprep.subr.mxu1 %v787_v25  ;;  %v582_v24 = vld [vmem:[%s1212_s4] ss:$0 sm:$0xff]  ;;  %s571_s22 = sshll.u32 %s789_s2, 4  ;;  %s572_s22 = int_to_ptr.vmem [resolvable:$true] %s571_s22 }
  0x36   :  { %671 = vmatprep.subr.mxu0 %v109_v38  ;;  %722 = vmatpush3.msra.mxu1 %v470_v55  ;;  %s764_s4 = scalar_lea.vmem %s572_s22, 32  ;;  %p769_p1 = scmp.lt.s32.totalorder %s572_s22, %s572_s22 }
  0x37   :  { %672 = vmatpush3.msra.mxu0 %v93_v39  ;;  %723 = vmatprep.subr.mxu1 %v787_v25  ;;  %p765_p0 = scmp.ne.s32.totalorder %s572_s22, %s764_s4  ;;  %p770_p2 = scmp.lt.s32.totalorder %s764_s4, %s764_s4 }
  0x38   :  { %673 = vmatprep.subr.mxu0 %v108_v40  ;;  %724 = vmatpush3.msra.mxu1 %v469_v56 }
  0x39   :  { %674 = vmatpush3.msra.mxu0 %v92_v41  ;;  %725 = vmatprep.subr.mxu1 %v787_v25  ;;  %p771_p3 = por %p770_p2, %p769_p1 }
  0x3a   :  { %675 = vmatprep.subr.mxu0 %v107_v42  ;;  %726 = vmatpush3.msra.mxu1 %v468_v57 }
  0x3b   :  { %676 = vmatpush3.msra.mxu0 %v91_v43  ;;  %727 = vmatprep.subr.mxu1 %v787_v25  ;;  %p772_p4 = pnand %p771_p3, %p765_p0 }
  0x3c   :  { %677 = vmatprep.subr.mxu0 %v106_v44  ;;  %728 = vmatpush3.msra.mxu1 %v467_v58 }
  0x3d   :  { %678 = vmatpush3.msra.mxu0 %v90_v45  ;;  %729 = vmatprep.subr.mxu1 %v787_v25 }
  0x3e   :  { %679 = vmatprep.subr.mxu0 %v105_v46  ;;  %730 = vmatpush3.msra.mxu1 %v466_v59 }
  0x3f   :  { %680 = vmatpush3.msra.mxu0 %v89_v47  ;;  %731 = vmatprep.subr.mxu1 %v787_v25 }
  0x40   :  { %681 = vmatprep.subr.mxu0 %v104_v48  ;;  %732 = vmatpush3.msra.mxu1 %v465_v60 }
  0x41   :  { %682 = vmatpush3.msra.mxu0 %v88_v49  ;;  %733 = vmatprep.subr.mxu1 %v787_v25 }
  0x42   :  { %683 = vmatprep.subr.mxu0 %v103_v50  ;;  %734 = vmatpush3.msra.mxu1 %v464_v61 }
  0x43   :  { %684 = vmatpush3.msra.mxu0 %v87_v51  ;;  %735 = vmatprep.subr.mxu1 %v787_v25 }
  0x44   :  { %377 = vmatmul.mubr.f32.vlgmr.msra.gmra.mxu0 %v1032_v16  ;;  %736 = vmatpush3.msra.mxu1 %v463_v62 }
  0x45   :  { %737 = vmatprep.subr.mxu1 %v787_v25 }
  0x46   :  { %738 = vmatpush3.msra.mxu1 %v462_v63 }
  0x47   :  { %739 = vmatprep.subr.mxu1 %v787_v25 }
  0x48   :  { %740 = vmatpush3.msra.mxu1 %v461_v0 }
  0x49   :  { %741 = vmatprep.subr.mxu1 %v787_v25 }
  0x4a   :  { %742 = vmatpush3.msra.mxu1 %v460_v1 }
  0x4b   :  { %743 = vmatprep.subr.mxu1 %v787_v25 }
  0x4c   :  { %744 = vmatpush3.msra.mxu1 %v459_v2 }
  0x4d   :  { %745 = vmatprep.subr.mxu1 %v787_v25 }
  0x4e   :  { %746 = vmatpush3.msra.mxu1 %v458_v3 }
  0xe2   :  { %v615_v8 = vpop.f32.mrf.mxu0 }
  0xe4   :  { %v616_v9 = vpop.f32.mrf.mxu0 }
  0xe5   :  { %v617_v10 = vadd.f32 %v616_v9, %v615_v8 }
  0xe6   :  { %v650_v4 = vpop.f32.mrf.mxu1 }
  0xe7   :  { %v239_v12 = vadd.f32 %v617_v10, %v579_v11 }
  0xe8   :  { %v651_v5 = vpop.f32.mrf.mxu1 }
  0xe9   :  { %v652_v13 = vadd.f32 %v651_v5, %v650_v4 }
  0xeb   :  { %v309_v16 = vadd.f32 %v652_v13, %v239_v12 }
  0xed   :  { %v448_v6 = vpop.f32.mrf.mxu1 }
  0xef   :  { %v714_v7 = vpop.f32.mrf.mxu1 }
 0x104   :  { %v685_v14 = vpop.f32.mrf.mxu0 }
 0x106   :  { %v686_v15 = vpop.f32.mrf.mxu0 }
 0x107   :  { %v687_v17 = vadd.f32 %v686_v15, %v685_v14 }
 0x109   :  { %v379_v18 = vadd.f32 %v687_v17, %v309_v16 }
 0x10b   :  { %v449_v19 = vadd.f32 %v448_v6, %v379_v18 }
 0x10d   :  { %v581_v20 = vmul.f32 -1.442695, %v449_v19 }
 0x10f   :  { %756 = vpow2.f32 %v581_v20 }
 0x11c   :  { %v757_v21 = vpop.eup %756 }
 0x11d   :  { %v455_v22 = vadd.f32 1.0, %v757_v21 }
 0x11f   :  { %758 = vrcp.f32 %v455_v22 }
 0x12c   :  { %v759_v23 = vpop.eup %758 }
 0x12d   :  { %748 = vmatmul.mubr.f32.vlgmr.msra.gmra.mxu1 %v759_v23 }
 0x1ed   :  { %v547_v25 = vpop.f32.mrf.mxu1 }
 0x1ee   :  { %v548_v26 = vadd.f32 %v582_v24, %v547_v25 }
 0x1ef   :  { %v749_v27 = vpop.f32.mrf.mxu1 }
 0x1f0   :  { %v552_v28 = vsel %vm551_vm2, %v548_v26, -inf }
 0x1f1   :  { %553 = vmax.xlane.f32.xlu0 %v552_v28 }
 0x27a   :  { %v554_v29 = vpop.xlane.xlu0 %553 }
 0x27b   :  { %v555_v30 = vsub.f32 %v548_v26, %v554_v29 }
 0x27d   :  { %v556_v31 = vmul.f32 1.442695, %v555_v30 }
 0x27f   :  { %760 = vpow2.f32 %v556_v31 }
 0x28c   :  { %v761_v32 = vpop.eup %760 }
 0x28d   :  { %v558_v33 = vsel %vm551_vm2, %v761_v32, 0.0 }
 0x28e   :  { %559 = vadd.xlane.f32.xlu0 %v558_v33 }
 0x317   :  { %v560_v34 = vpop.xlane.xlu0 %559 }
 0x318   :  { %762 = vlog2.f32 %v560_v34 }
 0x325   :  { %v763_v35 = vpop.eup %762 }
 0x326   :  { %v562_v36 = vmul.f32 0.6931472, %v763_v35 }
 0x328   :  { %v563_v37 = vsub.f32 %v555_v30, %v562_v36 }
 0x32a   :  { %564 = vst [vmem:[#allocation2] sm:$0x3] %v563_v37 }
 0x32b   :  { %775 = shalt.err (!%p772_p4)
}
 0x32c   :  { %574 = dma.vmem_to_hbm [thread:$0]  %s572_s22, 32, %s1213_s5, [#allocation3]  }
 0x32d   :  { %784 = dma.done.wait [#allocation3], 32  }
 0x32e   :  { %785 = vsyncadd [#allocation3], 4294967264 }
 0x32f   :  { %578 = vsyncpa [#allocation3], 1 }

</bundles_post_ra>
